<compile_context>
chip_gen: v7x
topology: tpu7x:2x2x1
jax: 0.10.0
libtpu: 0.0.40
codegen_flags: <defaults>
</compile_context>

<pallas_src>
import functools

import jax
import jax.numpy as jnp
from jax.experimental import pallas as pl
from jax.experimental.pallas import tpu as pltpu


def _learnable_sigmoid_kernel(x_ref, slope_ref, o_ref, *, beta):
    # x_ref:     (tile_r, lane)
    # slope_ref: (1,      lane)  f32 -- broadcasts over rows (sublanes)
    x = x_ref[...].astype(jnp.float32)
    s = slope_ref[...]
    # beta * sigmoid(slope * x); logistic/exp lowers to the EUP slot.
    y = beta * jax.nn.sigmoid(x * s)
    o_ref[...] = y.astype(o_ref.dtype)


def learnable_sigmoid(x, slope, beta=1.0):
    """x: (..., in_features), slope: (in_features,). Returns beta*sigmoid(slope*x)."""
    in_features = x.shape[-1]
    assert slope.shape == (in_features,)
    orig_shape = x.shape
    out_dtype = x.dtype

    x2d = x.reshape(-1, in_features)
    rows = x2d.shape[0]

    # ---- lane packing: make the lane (last) dim a dense multiple of 128. ----
    g = max(1, 128 // in_features) if in_features < 128 else 1
    pad_g = (-rows) % g
    if pad_g:
        x2d = jnp.pad(x2d, ((0, pad_g), (0, 0)))
    packed_rows = x2d.shape[0] // g
    lane = g * in_features
    x_packed = x2d.reshape(packed_rows, lane)
    # Row-major reshape concatenates g consecutive rows along lanes, so slope
    # must be tiled g times in that same order.
    slope_packed = jnp.tile(slope.astype(jnp.float32), g).reshape(1, lane)

    # ---- row tiling: ~2 MiB per block => <=~8 MiB pipelined (in+out, 2x buf),
    # comfortably inside v5e's 16 MiB scoped default and v7x's 64 MiB VMEM. ---
    itemsize = jnp.dtype(out_dtype).itemsize
    budget_rows = max(8, ((2 << 20) // (lane * itemsize)) // 8 * 8)
    tile_r = min(1024, budget_rows)

    if packed_rows <= tile_r:
        # Single full-extent block (satisfies the (8,128) rule via full dims).
        tile_r = packed_rows
        padded_rows = packed_rows
    else:
        padded_rows = pl.cdiv(packed_rows, tile_r) * tile_r
        if padded_rows != packed_rows:
            x_packed = jnp.pad(x_packed, ((0, padded_rows - packed_rows), (0, 0)))

    grid = (padded_rows // tile_r,)
    kernel = functools.partial(_learnable_sigmoid_kernel, beta=float(beta))

    out = pl.pallas_call(
        kernel,
        out_shape=jax.ShapeDtypeStruct((padded_rows, lane), out_dtype),
        grid=grid,
        in_specs=[
            pl.BlockSpec((tile_r, lane), lambda i: (i, 0)),
            pl.BlockSpec((1, lane), lambda i: (0, 0)),  # slope: constant block
        ],
        out_specs=pl.BlockSpec((tile_r, lane), lambda i: (i, 0)),
        compiler_params=pltpu.CompilerParams(
            dimension_semantics=("parallel",),  # shard row tiles across TCs (v7x)
        ),
    )(x_packed, slope_packed)

    out = out[:packed_rows].reshape(-1, in_features)[:rows]
    return out.reshape(orig_shape)


if __name__ == "__main__":
    key = jax.random.PRNGKey(0)
    batch, seq, in_features = 2, 8, 32
    beta = 1.0

    # Deterministic input + parameter init (module initializes slope = ones).
    x = jax.random.normal(key, (batch, seq, in_features), dtype=jnp.float32)
    slope = jnp.ones((in_features,), dtype=jnp.float32)

    y = learnable_sigmoid(x, slope, beta=beta)
    y = jax.block_until_ready(y)

    # Reference check against plain JAX.
    y_ref = beta * jax.nn.sigmoid(slope * x)
    assert y.shape == x.shape
    assert jnp.allclose(y, y_ref, atol=1e-5, rtol=1e-5)

    print("KERNEL_OK")
</pallas_src>

<mosaic_0001>
module attributes {stable_mosaic.version = 11 : i64} {
  func.func @_learnable_sigmoid_kernel(%arg0: i32, %arg1: memref<4x128xf32, #tpu.memory_space<vmem>>, %arg2: memref<1x128xf32, #tpu.memory_space<vmem>>, %arg3: memref<4x128xf32, #tpu.memory_space<vmem>>) attributes {dimension_semantics = [#tpu.dimension_semantics<parallel>], iteration_bounds = array<i64: 1>, scalar_prefetch = 0 : i64, scratch_operands = 0 : i64, tpu.core_type = #tpu.core_type<tc>, window_params = [{transform_indices = @transform_0, window_bounds = array<i64: 4, 128>}, {pipeline_mode = #tpu.pipeline_mode<synchronous>, transform_indices = @transform_1, window_bounds = array<i64: 1, 128>}, {transform_indices = @transform_2, window_bounds = array<i64: 4, 128>}]} {
    %c0 = arith.constant 0 : index
    %c0_0 = arith.constant 0 : index
    %0 = vector.load %arg1[%c0, %c0_0] : memref<4x128xf32, #tpu.memory_space<vmem>>, vector<4x128xf32>
    %c0_1 = arith.constant 0 : index
    %c0_2 = arith.constant 0 : index
    %1 = vector.load %arg2[%c0_1, %c0_2] : memref<1x128xf32, #tpu.memory_space<vmem>>, vector<1x128xf32>
    %2 = vector.broadcast %1 : vector<1x128xf32> to vector<4x128xf32>
    %3 = arith.mulf %0, %2 : vector<4x128xf32>
    %4 = arith.negf %3 : vector<4x128xf32>
    %5 = math.exp %4 : vector<4x128xf32>
    %cst = arith.constant 1.000000e+00 : f32
    %6 = vector.broadcast %cst : f32 to vector<4x128xf32>
    %7 = arith.addf %6, %5 : vector<4x128xf32>
    %8 = arith.divf %6, %7 : vector<4x128xf32>
    %cst_3 = arith.constant 1.000000e+00 : f32
    %9 = vector.broadcast %cst_3 : f32 to vector<4x128xf32>
    %10 = arith.mulf %9, %8 : vector<4x128xf32>
    %c0_4 = arith.constant 0 : index
    %c0_5 = arith.constant 0 : index
    %11 = vector.load %arg3[%c0_4, %c0_5] : memref<4x128xf32, #tpu.memory_space<vmem>>, vector<4x128xf32>
    tpu.vector_store %arg3[%c0_4, %c0_5], %10 {strides = array<i32>} : memref<4x128xf32, #tpu.memory_space<vmem>>, vector<4x128xf32>,
    return
  }
  func.func @transform_0(%arg0: i32) -> (i32, i32) {
    %c0_i32 = arith.constant 0 : i32
    %c0_i32_0 = arith.constant 0 : i32
    return %arg0, %c0_i32 : i32, i32
  }
  func.func @transform_1(%arg0: i32) -> (i32, i32) {
    %c0_i32 = arith.constant 0 : i32
    %c0_i32_0 = arith.constant 0 : i32
    %c0_i32_1 = arith.constant 0 : i32
    return %c0_i32, %c0_i32_0 : i32, i32
  }
  func.func @transform_2(%arg0: i32) -> (i32, i32) {
    %c0_i32 = arith.constant 0 : i32
    %c0_i32_0 = arith.constant 0 : i32
    return %arg0, %c0_i32 : i32, i32
  }
}

</mosaic_0001>

<bundles_post_ra>
// kernel: tpu_custom_call.1
= control target key start
LH: loop header
LB: loop body
LE: loop exit
PB: predicated region body
PF: predicated region fallthrough
CT: control target
= control target key end

     0   :  { %7 = vsyncpa [#allocation3], 0  ;;  %s155_s0 = inlined_call_operand.hbm [shape: f32[4,128], index: 0, kind: input, shape index: {}]   ;;  %s156_s1 = inlined_call_operand.vmem [shape: f32[1,128], index: 1, kind: input, shape index: {}]   ;;  %s157_s2 = inlined_call_operand.hbm [shape: f32[4,128], index: 2, kind: output, shape index: {}]  }
   0x1   :  { %8 = vsyncpa [#allocation4], 0  ;;  %s111_s9 = smov [#allocation2]   ;;  %s63_s13 = scalar_lea.hbm %s155_s0, 64 }
   0x2   :  { %s15_s10 = sshll.u32 %s111_s9, 4  ;;  %p64_p0 = scmp.ne.s32.totalorder %s155_s0, %s63_s13  ;;  %s16_s10 = int_to_ptr.vmem [resolvable:$true] %s15_s10 }
   0x3   :  { %p67_p1 = scmp.lt.u32.totalorder %s63_s13, %s155_s0 }
   0x5   :  { %p69_p2 = pnand %p67_p1, %p64_p0 }
   0x7   :  { %72 = shalt.err (!%p69_p2)
}
   0x8   :  { %s73_s18 = scalar_lea.vmem %s16_s10, 64  ;;  %p78_p4 = scmp.lt.s32.totalorder %s16_s10, %s16_s10 }
   0x9   :  { %p74_p3 = scmp.ne.s32.totalorder %s16_s10, %s73_s18  ;;  %p79_p5 = scmp.lt.s32.totalorder %s73_s18, %s73_s18 }
   0xb   :  { %p80_p6 = por %p79_p5, %p78_p4 }
   0xd   :  { %p81_p7 = pnand %p80_p6, %p74_p3 }
   0xf   :  { %84 = shalt.err (!%p81_p7)
}
  0x10   :  { %18 = dma.hbm_to_vmem [thread:$0]  %s155_s0, 64, %s16_s10, [#allocation3]  }
  0x11   :  { %107 = dma.done.wait [#allocation3], 64  }
  0x12   :  { %108 = vsyncadd [#allocation3], 4294967232  ;;  %v24_v0 = vld [vmem:[#allocation2] sm:$0xf]  ;;  %s112_s23 = smov [#allocation5]  }
  0x13   :  { %v55_v1 = vld [vmem:[%s156_s1] ss:$0 sm:$0xff]  ;;  %s46_s24 = sshll.u32 %s112_s23, 4  ;;  %s47_s24 = int_to_ptr.vmem [resolvable:$true] %s46_s24 }
  0x14   :  { %v32_v2 = vmul.f32 %v55_v1, %v24_v0  ;;  %s85_s25 = scalar_lea.vmem %s47_s24, 64  ;;  %p90_p9 = scmp.lt.s32.totalorder %s47_s24, %s47_s24 }
  0x15   :  { %p86_p8 = scmp.ne.s32.totalorder %s47_s24, %s85_s25  ;;  %p91_p10 = scmp.lt.s32.totalorder %s85_s25, %s85_s25 }
  0x16   :  { %v56_v3 = vmul.f32 -1.442695, %v32_v2 }
  0x17   :  { %p92_p11 = por %p91_p10, %p90_p9 }
  0x18   :  { %59 = vpow2.f32 %v56_v3 }
  0x19   :  { %p93_p12 = pnand %p92_p11, %p86_p8 }
  0x22   :  { %v60_v4 = vpop.eup %59 }
  0x23   :  { %v36_v5 = vadd.f32 1.0, %v60_v4 }
  0x25   :  { %61 = vrcp.f32 %v36_v5 }
  0x2f   :  { %v62_v6 = vpop.eup %61 }
  0x30   :  { %39 = vst [vmem:[#allocation5] sm:$0xf] %v62_v6 }
  0x31   :  { %96 = shalt.err (!%p93_p12)
}
  0x32   :  { %s97_s26 = scalar_lea.hbm %s157_s2, 64 }
  0x33   :  { %p98_p13 = scmp.ne.s32.totalorder %s157_s2, %s97_s26  ;;  %p101_p0 = scmp.lt.u32.totalorder %s97_s26, %s157_s2 }
  0x35   :  { %p103_p1 = pnand %p101_p0, %p98_p13 }
  0x37   :  { %106 = shalt.err (!%p103_p1)
}
  0x38   :  { %49 = dma.vmem_to_hbm [thread:$0]  %s47_s24, 64, %s157_s2, [#allocation4]  }
  0x39   :  { %109 = dma.done.wait [#allocation4], 64  }
  0x3a   :  { %110 = vsyncadd [#allocation4], 4294967232 }
  0x3b   :  { %53 = vsyncpa [#allocation3], 1 }
  0x3c   :  { %54 = vsyncpa [#allocation4], 1 }

</bundles_post_ra>
